<compile_context>
chip_gen: v7x
topology: tpu7x:2x2x1
jax: 0.10.0
libtpu: 0.0.40
codegen_flags: <defaults>
</compile_context>

<pallas_src>
import functools

import jax
import jax.numpy as jnp
from jax import lax
from jax.experimental import pallas as pl
from jax.experimental.pallas import tpu as pltpu


_NEG = -1e30  # large finite negative (avoids -inf - -inf NaNs on padded cols)


# ---------------------------------------------------------------------------
# Tiling helpers
# ---------------------------------------------------------------------------

def _round_up(x, m):
    return ((x + m - 1) // m) * m


def _pick_tile(dim, target, align):
    """Tile size + padded extent for a dim we are allowed to pad per call."""
    if dim <= target:
        t = _round_up(dim, align)
    else:
        t = target
    return t, _round_up(dim, t)


def _divisor_tile(dim, target, align):
    """Largest multiple of `align` <= target that divides `dim` (dim % align == 0)."""
    t = max(align, (min(dim, target) // align) * align)
    while dim % t != 0:
        t -= align
    return t


def _vmem_limit_bytes(*buf_bytes):
    """Explicit scoped-VMEM budget: double-buffered tiles + slack, capped."""
    total = 2 * sum(int(b) for b in buf_bytes) + (2 << 20)
    return int(min(max(total, 4 << 20), 64 << 20))


# ---------------------------------------------------------------------------
# Kernel 1: tiled output projection (logits)  -- grid=(M/tm, V/tn, D/tk)
# The f32 output block is resident across the K axis, so we accumulate into
# it directly (no acc scratch, no finalize copy).
# ---------------------------------------------------------------------------

def _matmul_kernel(a_ref, b_ref, o_ref):
    @pl.when(pl.program_id(2) == 0)
    def _init():
        o_ref[...] = jnp.zeros_like(o_ref)

    o_ref[...] += jnp.dot(a_ref[...], b_ref[...],
                          preferred_element_type=jnp.float32)


def _pallas_output_projection(feat_2d, w_dv, v_true):
    """feat_2d: (M, Dp) bf16, w_dv: (Dp, Vp) bf16 -> logits (M, v_true) f32."""
    M, D = feat_2d.shape
    Dw, Vp = w_dv.shape
    assert D == Dw
    tm, Mp = _pick_tile(M, 512, 16)
    tn = _divisor_tile(Vp, 512, 128)
    tk = _divisor_tile(D, 512, 128)
    if Mp != M:
        feat_2d = jnp.pad(feat_2d, ((0, Mp - M), (0, 0)))

    vmem = _vmem_limit_bytes(tm * tk * 2, tk * tn * 2, tm * tn * 4)
    out = pl.pallas_call(
        _matmul_kernel,
        out_shape=jax.ShapeDtypeStruct((Mp, Vp), jnp.float32),
        grid_spec=pltpu.PrefetchScalarGridSpec(
            num_scalar_prefetch=0,
            grid=(Mp // tm, Vp // tn, D // tk),
            in_specs=[
                pl.BlockSpec((tm, tk), lambda i, j, k: (i, k)),
                pl.BlockSpec((tk, tn), lambda i, j, k: (k, j)),
            ],
            out_specs=pl.BlockSpec((tm, tn), lambda i, j, k: (i, j)),
        ),
        compiler_params=pltpu.CompilerParams(
            dimension_semantics=("parallel", "parallel", "arbitrary"),
            vmem_limit_bytes=vmem),
    )(feat_2d, w_dv)
    return out[:M, :v_true]


# ---------------------------------------------------------------------------
# Kernels 2a/2b: fused projection + softmax, two-pass.
#   Pass 1 (stats):     grid=(M/tm, V/tn), running row max / sum-exp resident
#                       across the V axis (tiny (tm,1) outputs).
#   Pass 2 (normalize): grid=(M/tm, V/tn), recompute logits tile and write the
#                       normalized (tm, tn) tile straight to HBM.
# No (tm, Vp) resident block, no per-step full-row rescale.
# ---------------------------------------------------------------------------

def _make_stats_kernel(tn, v_true, v_pad):
    mask_cols = (v_true != v_pad)  # only emit the mask when padding exists

    def kernel(feat_ref, w_ref, m_ref, l_ref):
        j = pl.program_id(1)

        @pl.when(j == 0)
        def _init():
            m_ref[...] = jnp.full_like(m_ref, _NEG)
            l_ref[...] = jnp.zeros_like(l_ref)

        s = jnp.dot(feat_ref[...], w_ref[...],
                    preferred_element_type=jnp.float32)
        if mask_cols:
            cols = j * tn + lax.broadcasted_iota(jnp.int32, s.shape, 1)
            s = jnp.where(cols < v_true, s, _NEG)

        m_prev = m_ref[...]
        m_new = jnp.maximum(m_prev, jnp.max(s, axis=-1, keepdims=True))
        l_ref[...] = (l_ref[...] * jnp.exp(m_prev - m_new)
                      + jnp.sum(jnp.exp(s - m_new), axis=-1, keepdims=True))
        m_ref[...] = m_new

    return kernel


def _make_normalize_kernel(log_probs):
    # Padded vocab columns (zero weight rows) produce harmless finite values
    # that are sliced off outside the kernel; no mask needed here.
    def kernel(feat_ref, w_ref, m_ref, l_ref, out_ref):
        s = jnp.dot(feat_ref[...], w_ref[...],
                    preferred_element_type=jnp.float32)
        if log_probs:
            out_ref[...] = (s - m_ref[...] - jnp.log(l_ref[...])).astype(out_ref.dtype)
        else:
            # Exact divide: rows must sum to 1 (approx reciprocal is not enough).
            out_ref[...] = (jnp.exp(s - m_ref[...]) / l_ref[...]).astype(out_ref.dtype)

    return kernel


def _pallas_fused_projection_softmax(feat_2d, w_dv, v_true, log_probs):
    """feat_2d: (M, Dp) bf16, w_dv: (Dp, Vp) bf16 -> (log-)probs (M, v_true) f32."""
    M, D = feat_2d.shape
    Dw, Vp = w_dv.shape
    assert D == Dw
    # TODO(synk): D (embed_dim) is kept untiled here; very large embed_dim would
    #             need an inner K loop / emit_pipeline inside the body.
    tm, Mp = _pick_tile(M, 256, 16)
    tn = _divisor_tile(Vp, 512, 128)
    if Mp != M:
        feat_2d = jnp.pad(feat_2d, ((0, Mp - M), (0, 0)))
    grid = (Mp // tm, Vp // tn)

    # Pass 1: per-row softmax stats (running max / sum-exp) over the V axis.
    vmem1 = _vmem_limit_bytes(tm * D * 2, D * tn * 2, 2 * tm * 4)
    m_stat, l_stat = pl.pallas_call(
        _make_stats_kernel(tn, v_true, Vp),
        out_shape=(jax.ShapeDtypeStruct((Mp, 1), jnp.float32),
                   jax.ShapeDtypeStruct((Mp, 1), jnp.float32)),
        grid_spec=pltpu.PrefetchScalarGridSpec(
            num_scalar_prefetch=0,
            grid=grid,
            in_specs=[
                pl.BlockSpec((tm, D), lambda i, j: (i, 0)),
                pl.BlockSpec((D, tn), lambda i, j: (0, j)),
            ],
            out_specs=[pl.BlockSpec((tm, 1), lambda i, j: (i, 0)),
                       pl.BlockSpec((tm, 1), lambda i, j: (i, 0))],
        ),
        compiler_params=pltpu.CompilerParams(
            dimension_semantics=("parallel", "arbitrary"),
            vmem_limit_bytes=vmem1),
    )(feat_2d, w_dv)

    # Pass 2: recompute each logits tile and write normalized tiles to HBM.
    vmem2 = _vmem_limit_bytes(tm * D * 2, D * tn * 2, tm * tn * 4, 2 * tm * 4)
    out = pl.pallas_call(
        _make_normalize_kernel(log_probs),
        out_shape=jax.ShapeDtypeStruct((Mp, Vp), jnp.float32),
        grid_spec=pltpu.PrefetchScalarGridSpec(
            num_scalar_prefetch=0,
            grid=grid,
            in_specs=[
                pl.BlockSpec((tm, D), lambda i, j: (i, 0)),
                pl.BlockSpec((D, tn), lambda i, j: (0, j)),
                pl.BlockSpec((tm, 1), lambda i, j: (i, 0)),
                pl.BlockSpec((tm, 1), lambda i, j: (i, 0)),
            ],
            out_specs=pl.BlockSpec((tm, tn), lambda i, j: (i, j)),
        ),
        compiler_params=pltpu.CompilerParams(
            dimension_semantics=("parallel", "parallel"),
            vmem_limit_bytes=vmem2),
    )(feat_2d, w_dv, m_stat, l_stat)
    return out[:M, :v_true]


# ---------------------------------------------------------------------------
# Kernel 3: row-tiled (log-)softmax fallback (when only logits are given)
# ---------------------------------------------------------------------------

def _softmax_rows_kernel(x_ref, o_ref, *, log_probs):
    x = x_ref[...].astype(jnp.float32)
    m = jnp.max(x, axis=-1, keepdims=True)
    e = jnp.exp(x - m)
    s = jnp.sum(e, axis=-1, keepdims=True)
    if log_probs:
        o_ref[...] = (x - m - jnp.log(s)).astype(o_ref.dtype)
    else:
        o_ref[...] = (e / s).astype(o_ref.dtype)   # exact divide: rows sum to 1


def _pallas_row_softmax(x_2d, log_probs):
    M, V = x_2d.shape
    Vp = _round_up(V, 128)
    # Derive tm from a per-call VMEM budget (in + out, double-buffered, f32).
    budget = 24 << 20
    tm_cap = max(16, (budget // max(1, Vp * 4 * 4)) // 16 * 16)
    tm, Mp = _pick_tile(M, min(256, tm_cap), 16)
    # TODO(synk): very large vocab would need an online (V-tiled) softmax here.
    x = x_2d.astype(jnp.float32)
    if Vp != V:
        x = jnp.pad(x, ((0, 0), (0, Vp - V)), constant_values=_NEG)
    if Mp != M:
        x = jnp.pad(x, ((0, Mp - M), (0, 0)))
    vmem = _vmem_limit_bytes(tm * Vp * 4, tm * Vp * 4)
    out = pl.pallas_call(
        functools.partial(_softmax_rows_kernel, log_probs=log_probs),
        out_shape=jax.ShapeDtypeStruct((Mp, Vp), jnp.float32),
        grid_spec=pltpu.PrefetchScalarGridSpec(
            num_scalar_prefetch=0,
            grid=(Mp // tm,),
            in_specs=[pl.BlockSpec((tm, Vp), lambda i: (i, 0))],
            out_specs=pl.BlockSpec((tm, Vp), lambda i: (i, 0)),
        ),
        compiler_params=pltpu.CompilerParams(
            dimension_semantics=("parallel",),
            vmem_limit_bytes=vmem),
    )(x)
    return out[:M, :V]


# ---------------------------------------------------------------------------
# Decoder module (JAX / Pallas)
# ---------------------------------------------------------------------------

class FairseqDecoder:
    """Minimal concrete FairseqDecoder: embedding -> linear output projection."""

    def __init__(self, dictionary, embed_dim=128, key=None):
        self.dictionary = dictionary
        self.onnx_trace = False
        self.adaptive_softmax = None  # TODO(synk): adaptive_softmax path not implemented
        vocab = len(dictionary)
        self.vocab = vocab
        self.embed_dim = embed_dim
        self._d_pad = _round_up(embed_dim, 128)
        # Pad vocab up to a multiple of the V tile so projection tiles stay large.
        v_tile = min(512, _round_up(vocab, 128))
        self._v_pad = _round_up(vocab, v_tile)

        if key is None:
            key = jax.random.PRNGKey(0)
        k_emb, k_out = jax.random.split(key)
        emb = jax.random.normal(k_emb, (vocab, embed_dim), dtype=jnp.float32) * 0.02
        w = jax.random.normal(k_out, (embed_dim, vocab), dtype=jnp.float32) * 0.02
        # bf16 MXU operands; pre-transposed (D, V) weight; one-time padding
        # (no per-forward .T / pad of the full weight matrix).
        self.embed_tokens = jnp.pad(
            emb, ((0, 0), (0, self._d_pad - embed_dim))).astype(jnp.bfloat16)
        self.output_weight = jnp.pad(
            w, ((0, self._d_pad - embed_dim), (0, self._v_pad - vocab))
        ).astype(jnp.bfloat16)

    # ---- forward contract ------------------------------------------------
    def forward(self, prev_output_tokens, encoder_out=None, **kwargs):
        x, extra = self.extract_features(
            prev_output_tokens, encoder_out=encoder_out, **kwargs)
        x = self.output_layer(x)
        return (x, extra)

    def extract_features(self, prev_output_tokens, encoder_out=None, **kwargs):
        # TODO(synk): the gather could be folded into the projection pipeline via
        #             PrefetchScalarGridSpec + pl.Element row-gather; kept as XLA glue.
        feats_pad = jnp.take(self.embed_tokens, prev_output_tokens, axis=0)  # (B,T,d_pad)
        # Keep lane-padded activations end-to-end; slice the user-visible copy
        # only when embed_dim is not already 128-aligned.
        feats = feats_pad if self._d_pad == self.embed_dim else feats_pad[..., : self.embed_dim]
        return feats, {"attn": [None], "inner_states": [feats],
                       "features_padded": feats_pad}

    def _features_to_2d(self, features):
        B, T, D = features.shape
        feat_2d = features.reshape(B * T, D).astype(jnp.bfloat16)
        if D != self._d_pad:
            feat_2d = jnp.pad(feat_2d, ((0, 0), (0, self._d_pad - D)))
        return feat_2d, B, T

    def output_layer(self, features, **kwargs):
        feat_2d, B, T = self._features_to_2d(features)
        logits_2d = _pallas_output_projection(feat_2d, self.output_weight, self.vocab)
        return logits_2d.reshape(B, T, self.vocab)

    def get_normalized_probs(self, net_output, log_probs, sample=None):
        # TODO(synk): adaptive_softmax branch has no clean Pallas equivalent here.
        logits = net_output[0]
        extra = net_output[1] if isinstance(net_output, (tuple, list)) and len(net_output) > 1 else None
        feats = None
        if isinstance(extra, dict):
            feats = extra.get("features_padded", extra.get("features"))
        if feats is not None:
            # Fused projection + two-pass online softmax: the full (M, V) logits
            # tensor never round-trips through HBM; each normalized tile is
            # written straight to HBM (no (tm, Vp) resident block).
            feat_2d, B, T = self._features_to_2d(feats)
            out = _pallas_fused_projection_softmax(
                feat_2d, self.output_weight, self.vocab, log_probs)
            return out.reshape(B, T, self.vocab)
        # Fallback: row-tiled softmax over the provided logits.
        B, T, V = logits.shape
        out = _pallas_row_softmax(logits.reshape(B * T, V), log_probs)
        return out.reshape(B, T, V)

    def max_positions(self):
        return 1e6

    def upgrade_state_dict(self, state_dict):
        return state_dict

    def prepare_for_onnx_export_(self):
        self.onnx_trace = True


# ---------------------------------------------------------------------------
# Demo
# ---------------------------------------------------------------------------

if __name__ == "__main__":
    batch, tgt_len, embed_dim, vocab = 2, 8, 128, 200  # vocab deliberately not x128

    dictionary = [f"tok_{i}" for i in range(vocab)]
    decoder = FairseqDecoder(dictionary, embed_dim=embed_dim, key=jax.random.PRNGKey(0))

    key_tok = jax.random.PRNGKey(0)
    prev_output_tokens = jax.random.randint(
        key_tok, (batch, tgt_len), minval=0, maxval=vocab, dtype=jnp.int32)

    logits, extra = decoder.forward(prev_output_tokens, encoder_out=None)
    log_probs = decoder.get_normalized_probs((logits, extra), log_probs=True)   # fused path
    probs = decoder.get_normalized_probs((logits, {}), log_probs=False)         # fallback path

    jax.block_until_ready(logits)
    jax.block_until_ready(log_probs)
    jax.block_until_ready(probs)

    assert logits.shape == (batch, tgt_len, vocab)
    assert log_probs.shape == (batch, tgt_len, vocab)
    assert probs.shape == (batch, tgt_len, vocab)

    # Light numerical sanity checks against plain JAX.
    ref_logp = jax.nn.log_softmax(logits.astype(jnp.float32), axis=-1)
    assert float(jnp.max(jnp.abs(log_probs - ref_logp))) < 2e-3
    assert float(jnp.max(jnp.abs(jnp.sum(probs, axis=-1) - 1.0))) < 1e-3

    print("KERNEL_OK")
</pallas_src>

<mosaic_0001>
module attributes {stable_mosaic.version = 11 : i64} {
  func.func @_matmul_kernel(%arg0: i32, %arg1: i32, %arg2: i32, %arg3: memref<16x128xbf16, #tpu.memory_space<vmem>>, %arg4: memref<128x256xbf16, #tpu.memory_space<vmem>>, %arg5: memref<16x256xf32, #tpu.memory_space<vmem>>) attributes {dimension_semantics = [#tpu.dimension_semantics<parallel>, #tpu.dimension_semantics<parallel>, #tpu.dimension_semantics<arbitrary>], iteration_bounds = array<i64: 1, 1, 1>, scalar_prefetch = 0 : i64, scratch_operands = 0 : i64, tpu.core_type = #tpu.core_type<tc>, window_params = [{transform_indices = @transform_0, window_bounds = array<i64: 16, 128>}, {transform_indices = @transform_1, window_bounds = array<i64: 128, 256>}, {transform_indices = @transform_2, window_bounds = array<i64: 16, 256>}]} {
    %c0_i32 = arith.constant 0 : i32
    %0 = arith.cmpi eq, %arg2, %c0_i32 : i32
    %1 = arith.extui %0 : i1 to i32
    %c0_i32_0 = arith.constant 0 : i32
    %2 = arith.cmpi ne, %1, %c0_i32_0 : i32
    scf.if %2 {
      %cst_8 = arith.constant 0.000000e+00 : f32
      %9 = vector.broadcast %cst_8 : f32 to vector<16x256xf32>
      %c0_9 = arith.constant 0 : index
      %c0_10 = arith.constant 0 : index
      %10 = vector.load %arg5[%c0_9, %c0_10] : memref<16x256xf32, #tpu.memory_space<vmem>>, vector<16x256xf32>
      tpu.vector_store %arg5[%c0_9, %c0_10], %9 {strides = array<i32>} : memref<16x256xf32, #tpu.memory_space<vmem>>, vector<16x256xf32>,
    } else {
    }
    %c0 = arith.constant 0 : index
    %c0_1 = arith.constant 0 : index
    %3 = vector.load %arg5[%c0, %c0_1] : memref<16x256xf32, #tpu.memory_space<vmem>>, vector<16x256xf32>
    %c0_2 = arith.constant 0 : index
    %c0_3 = arith.constant 0 : index
    %4 = vector.load %arg3[%c0_2, %c0_3] : memref<16x128xbf16, #tpu.memory_space<vmem>>, vector<16x128xbf16>
    %c0_4 = arith.constant 0 : index
    %c0_5 = arith.constant 0 : index
    %5 = vector.load %arg4[%c0_4, %c0_5] : memref<128x256xbf16, #tpu.memory_space<vmem>>, vector<128x256xbf16>
    %cst = arith.constant dense<0.000000e+00> : vector<16x256xf32>
    %6 = tpu.matmul %4, %5, %cst {dimension_numbers = #tpu.dot_dimension_numbers<[1], [0], [0], [1], [0, 0, 1, 1], [], []>} : vector<16x128xbf16>, vector<128x256xbf16>, vector<16x256xf32> -> vector<16x256xf32>
    %7 = arith.addf %3, %6 : vector<16x256xf32>
    %c0_6 = arith.constant 0 : index
    %c0_7 = arith.constant 0 : index
    %8 = vector.load %arg5[%c0_6, %c0_7] : memref<16x256xf32, #tpu.memory_space<vmem>>, vector<16x256xf32>
    tpu.vector_store %arg5[%c0_6, %c0_7], %7 {strides = array<i32>} : memref<16x256xf32, #tpu.memory_space<vmem>>, vector<16x256xf32>,
    return
  }
  func.func @transform_0(%arg0: i32, %arg1: i32, %arg2: i32) -> (i32, i32) {
    %c0_i32 = arith.constant 0 : i32
    return %arg0, %arg2 : i32, i32
  }
  func.func @transform_1(%arg0: i32, %arg1: i32, %arg2: i32) -> (i32, i32) {
    %c0_i32 = arith.constant 0 : i32
    return %arg2, %arg1 : i32, i32
  }
  func.func @transform_2(%arg0: i32, %arg1: i32, %arg2: i32) -> (i32, i32) {
    %c0_i32 = arith.constant 0 : i32
    return %arg0, %arg1 : i32, i32
  }
}

</mosaic_0001>

<bundles_post_ra>
// kernel: tpu_custom_call.1
= control target key start
LH: loop header
LB: loop body
LE: loop exit
PB: predicated region body
PF: predicated region fallthrough
CT: control target
= control target key end

     0   :  { %7 = vsyncpa [#allocation3], 0  ;;  %s412_s0 = inlined_call_operand.hbm [shape: bf16[16,128], index: 0, kind: input, shape index: {}]   ;;  %s413_s1 = inlined_call_operand.hbm [shape: bf16[128,256], index: 1, kind: input, shape index: {}]   ;;  %s414_s2 = inlined_call_operand.hbm [shape: f32[16,256], index: 2, kind: output, shape index: {}]  }
   0x1   :  { %8 = vsyncpa [#allocation6], 0 }
   0x2   :  { %9 = vsyncpa [#allocation4], 0  ;;  %s351_s9 = smov [#allocation2]   ;;  %s279_s13 = scalar_lea.hbm %s412_s0, 128 }
   0x3   :  { %s15_s10 = sshll.u32 %s351_s9, 4  ;;  %p280_p0 = scmp.ne.s32.totalorder %s412_s0, %s279_s13  ;;  %s16_s10 = int_to_ptr.vmem [resolvable:$true] %s15_s10 }
   0x4   :  { %p283_p1 = scmp.lt.u32.totalorder %s279_s13, %s412_s0 }
   0x6   :  { %p285_p2 = pnand %p283_p1, %p280_p0 }
   0x8   :  { %288 = shalt.err (!%p285_p2)
}
   0x9   :  { %s289_s18 = scalar_lea.vmem %s16_s10, 128  ;;  %p294_p4 = scmp.lt.s32.totalorder %s16_s10, %s16_s10 }
   0xa   :  { %p290_p3 = scmp.ne.s32.totalorder %s16_s10, %s289_s18  ;;  %p295_p5 = scmp.lt.s32.totalorder %s289_s18, %s289_s18 }
   0xc   :  { %p296_p6 = por %p295_p5, %p294_p4 }
   0xe   :  { %p297_p7 = pnand %p296_p6, %p290_p3 }
  0x10   :  { %300 = shalt.err (!%p297_p7)
}
  0x11   :  { %s352_s19 = smov 64   ;;  %s353_s20 = smov 4  }
  0x12   :  { %21 = dma.hbm_to_vmem [thread:$0]  %s412_s0, 128, %s16_s10, [#allocation3], %s352_s19, %s352_s19, %s353_s20  }
  0x13   :  { %s354_s23 = smov [#allocation5]   ;;  %s301_s27 = scalar_lea.hbm %s413_s1, 2048 }
  0x14   :  { %s27_s24 = sshll.u32 %s354_s23, 4  ;;  %p302_p8 = scmp.ne.s32.totalorder %s413_s1, %s301_s27  ;;  %s28_s24 = int_to_ptr.vmem [resolvable:$true] %s27_s24 }
  0x15   :  { %p305_p9 = scmp.lt.u32.totalorder %s301_s27, %s413_s1 }
  0x17   :  { %p307_p10 = pnand %p305_p9, %p302_p8 }
  0x19   :  { %310 = shalt.err (!%p307_p10)
}
  0x1a   :  { %s311_s4 = scalar_lea.vmem %s28_s24, 2048  ;;  %p316_p12 = scmp.lt.s32.totalorder %s28_s24, %s28_s24 }
  0x1b   :  { %p312_p11 = scmp.ne.s32.totalorder %s28_s24, %s311_s4  ;;  %p317_p13 = scmp.lt.s32.totalorder %s311_s4, %s311_s4 }
  0x1d   :  { %p318_p0 = por %p317_p13, %p316_p12 }
  0x1f   :  { %p319_p1 = pnand %p318_p0, %p312_p11 }
  0x21   :  { %322 = shalt.err (!%p319_p1)
}
  0x22   :  { %s355_s0 = smov 128   ;;  %s356_s5 = smov 8  }
  0x23   :  { %33 = dma.hbm_to_vmem [thread:$0]  %s413_s1, 2048, %s28_s24, [#allocation6], %s355_s0, %s355_s0, %s356_s5  }
  0x24   :  { %345 = dma.done.wait [#allocation3], 128  }
  0x25   :  { %346 = vsyncadd [#allocation3], 4294967168 }
  0x26   :  { %347 = dma.done.wait [#allocation6], 2048  }
  0x27   :  { %348 = vsyncadd [#allocation6], 4294965248  ;;  %v357_v0 = vmov 0   ;;  %v254_v1 = vld [vmem:[#allocation5 + $0x4] ss:$8 sps:$4 sm:$0xff]   ;;  %v278_v17 = vld [vmem:[#allocation2] sm:$0xff]  }
  0x28   :  { %189 = vmatprep.mubr.bf16.mxu0 %v357_v0  ;;  %v256_v2 = vld [vmem:[#allocation5] ss:$8 sps:$4 sm:$0xff]   ;;  %157 = vmatprep.subr.bf16.mxu0 %v254_v1  ;;  %v257_v3 = vld [vmem:[#allocation5 + $0x14] ss:$8 sps:$4 sm:$0xff]   ;;  %v259_v4 = vld [vmem:[#allocation5 + $0x10] ss:$8 sps:$4 sm:$0xff]  }
  0x29   :  { %158 = vmatpush1.bf16.msra.mxu0 %v256_v2  ;;  %v260_v5 = vld [vmem:[#allocation5 + $0x24] ss:$8 sps:$4 sm:$0xff]   ;;  %v262_v6 = vld [vmem:[#allocation5 + $0x20] ss:$8 sps:$4 sm:$0xff]   ;;  %v263_v7 = vld [vmem:[#allocation5 + $0x34] ss:$8 sps:$4 sm:$0xff]  }
  0x2a   :  { %159 = vmatprep.subr.bf16.mxu0 %v257_v3  ;;  %v265_v8 = vld [vmem:[#allocation5 + $0x30] ss:$8 sps:$4 sm:$0xff]   ;;  %v266_v9 = vld [vmem:[#allocation5 + $0x44] ss:$8 sps:$4 sm:$0xff]   ;;  %v268_v10 = vld [vmem:[#allocation5 + $0x40] ss:$8 sps:$4 sm:$0xff]  }
  0x2b   :  { %v269_v11 = vld [vmem:[#allocation5 + $0x54] ss:$8 sps:$4 sm:$0xff]   ;;  %v271_v12 = vld [vmem:[#allocation5 + $0x50] ss:$8 sps:$4 sm:$0xff]   ;;  %v272_v13 = vld [vmem:[#allocation5 + $0x64] ss:$8 sps:$4 sm:$0xff]  }
  0x2c   :  { %v274_v14 = vld [vmem:[#allocation5 + $0x60] ss:$8 sps:$4 sm:$0xff]   ;;  %v275_v15 = vld [vmem:[#allocation5 + $0x74] ss:$8 sps:$4 sm:$0xff]   ;;  %v277_v16 = vld [vmem:[#allocation5 + $0x70] ss:$8 sps:$4 sm:$0xff]  }
  0x2d   :  { %160 = vmatpush1.bf16.msra.mxu0 %v259_v4  ;;  %s358_s1 = smov [#allocation7]  }
  0x2e   :  { %161 = vmatprep.subr.bf16.mxu0 %v260_v5  ;;  %s213_s8 = sshll.u32 %s358_s1, 4  ;;  %s214_s8 = int_to_ptr.vmem [resolvable:$true] %s213_s8 }
  0x2f   :  { %s323_s9 = scalar_lea.vmem %s214_s8, 512  ;;  %p328_p3 = scmp.lt.s32.totalorder %s214_s8, %s214_s8 }
  0x30   :  { %p324_p2 = scmp.ne.s32.totalorder %s214_s8, %s323_s9  ;;  %p329_p4 = scmp.lt.s32.totalorder %s323_s9, %s323_s9 }
  0x31   :  { %162 = vmatpush1.bf16.msra.mxu0 %v262_v6 }
  0x32   :  { %163 = vmatprep.subr.bf16.mxu0 %v263_v7  ;;  %p330_p5 = por %p329_p4, %p328_p3 }
  0x34   :  { %p331_p6 = pnand %p330_p5, %p324_p2 }
  0x35   :  { %164 = vmatpush1.bf16.msra.mxu0 %v265_v8 }
  0x36   :  { %165 = vmatprep.subr.bf16.mxu0 %v266_v9 }
  0x39   :  { %166 = vmatpush1.bf16.msra.mxu0 %v268_v10 }
  0x3a   :  { %167 = vmatprep.subr.bf16.mxu0 %v269_v11 }
  0x3d   :  { %168 = vmatpush1.bf16.msra.mxu0 %v271_v12 }
  0x3e   :  { %169 = vmatprep.subr.bf16.mxu0 %v272_v13 }
  0x41   :  { %170 = vmatpush1.bf16.msra.mxu0 %v274_v14 }
  0x42   :  { %171 = vmatprep.subr.bf16.mxu0 %v275_v15 }
  0x45   :  { %172 = vmatpush1.bf16.msra.mxu0 %v277_v16 }
  0x48   :  { %190 = vmatmul.mubr.bf16.vlgmr.msra.gmra.mrb[0].mxu0 %v278_v17 }
 0x11b   :  { %v191_v18 = vpop.f32.mrb[0].mxu0 }
 0x11c   :  { %v193_v19 = vpop.f32.mrb[1].mxu0  ;;  %204 = vst [vmem:[#allocation7] sm:$0xff] %v191_v18 }
 0x11d   :  { %v195_v20 = vpop.f32.mrb[2].mxu0  ;;  %205 = vst [vmem:[#allocation7 + $0x8] sm:$0xff] %v193_v19 }
 0x11e   :  { %v197_v21 = vpop.f32.mrb[3].mxu0  ;;  %206 = vst [vmem:[#allocation7 + $0x10] sm:$0xff] %v195_v20 }
 0x11f   :  { %207 = vst [vmem:[#allocation7 + $0x18] sm:$0xff] %v197_v21 }
 0x120   :  { %334 = shalt.err (!%p331_p6)
}
 0x121   :  { %s335_s12 = scalar_lea.hbm %s414_s2, 512 }
 0x122   :  { %p336_p7 = scmp.ne.s32.totalorder %s414_s2, %s335_s12  ;;  %p339_p8 = scmp.lt.u32.totalorder %s335_s12, %s414_s2 }
 0x124   :  { %p341_p9 = pnand %p339_p8, %p336_p7 }
 0x126   :  { %344 = shalt.err (!%p341_p9)
}
 0x127   :  { %s359_s17 = smov 256   ;;  %s360_s18 = smov 16  }
 0x128   :  { %219 = dma.vmem_to_hbm [thread:$0]  %s214_s8, 512, %s414_s2, [#allocation4], %s359_s17, %s359_s17, %s360_s18  }
 0x129   :  { %349 = dma.done.wait [#allocation4], 512  }
 0x12a   :  { %350 = vsyncadd [#allocation4], 4294966784 }
 0x12b   :  { %223 = vsyncpa [#allocation3], 1 }
 0x12c   :  { %224 = vsyncpa [#allocation6], 1 }
 0x12d   :  { %225 = vsyncpa [#allocation4], 1 }

</bundles_post_ra>
